<compile_context>
chip_gen: v5e
topology: v5e:2x2
jax: 0.10.0
libtpu: 0.0.40
codegen_flags: <defaults>
</compile_context>

<pallas_src>
import math

import jax
import jax.numpy as jnp
from jax.experimental import pallas as pl
from jax.experimental.pallas import tpu as pltpu

P_DROP = 0.1                      # matches nn.Dropout(p=0.1) default
_TILE_BYTES_TARGET = 2 * 1024 * 1024   # ~2 MiB per x-tile (fits all generations)


def _pe_add_kernel(x_ref, pe_ref, o_ref):
    # (TILE_S, B, D) + (TILE_S, 1, D): broadcast over batch on the VPU.
    o_ref[...] = (x_ref[...] + pe_ref[...]).astype(o_ref.dtype)


def _pe_add_dropout_kernel(x_ref, pe_ref, m_ref, o_ref):
    # m_ref holds a pre-scaled keep mask: 0.0 (dropped) or 1/(1-p) (kept),
    # so dropout is a single fused multiply (no select, fewer live vregs).
    o_ref[...] = ((x_ref[...] + pe_ref[...]) * m_ref[...]).astype(o_ref.dtype)


def make_pe_table(d_model, max_len=500):
    """Deterministic construction of the 'pe' buffer, exactly as in __init__."""
    position = jnp.arange(max_len, dtype=jnp.float32)[:, None]              # (L, 1)
    div_term = jnp.exp(jnp.arange(0, d_model, 2, dtype=jnp.float32)
                       * (-math.log(10000.0) / d_model))                    # (ceil(D/2),)
    angles = position * div_term                                            # (L, ceil(D/2))
    pe = jnp.zeros((max_len, d_model), dtype=jnp.float32)
    pe = pe.at[:, 0::2].set(jnp.sin(angles))
    pe = pe.at[:, 1::2].set(jnp.cos(angles[:, : d_model // 2]))             # odd-D safe
    return pe[:, None, :]                                                   # (L, 1, D)


def _choose_tile_s(S, B, D, itemsize):
    """Pick a sequence-tile so one x tile is ~2 MiB (pipelined, VMEM-safe)."""
    rows = max(1, _TILE_BYTES_TARGET // max(1, B * D * itemsize))
    tile_s = min(S, rows)
    if tile_s >= 8:
        tile_s = (tile_s // 8) * 8
    return tile_s


def positional_encoding(x, pe, *, key=None, p_drop=P_DROP, training=True):
    """x: (S, B, D); pe: (max_len, 1, D) from make_pe_table."""
    S, B, D = x.shape
    pe_slice = pe[:S].astype(x.dtype)                 # glue: pe[:x.size(0)]

    tile_s = _choose_tile_s(S, B, D, x.dtype.itemsize)
    grid = (pl.cdiv(S, tile_s),)

    x_spec = pl.BlockSpec((tile_s, B, D), lambda i: (i, 0, 0))
    pe_spec = pl.BlockSpec((tile_s, 1, D), lambda i: (i, 0, 0))
    out_spec = pl.BlockSpec((tile_s, B, D), lambda i: (i, 0, 0))

    if training and p_drop > 0.0:
        if key is None:
            key = jax.random.PRNGKey(0)
        keep = jax.random.bernoulli(key, p=1.0 - p_drop, shape=x.shape)
        scale = jnp.asarray(1.0 / (1.0 - p_drop), dtype=x.dtype)
        mask = keep.astype(x.dtype) * scale           # 0 or 1/(1-p), inverted dropout
        kernel = _pe_add_dropout_kernel
        in_specs = [x_spec, pe_spec,
                    pl.BlockSpec((tile_s, B, D), lambda i: (i, 0, 0))]
        args = (x, pe_slice, mask)
        bytes_accessed = 3 * x.nbytes + pe_slice.nbytes
        flops = 2 * x.size
    else:
        kernel = _pe_add_kernel                       # dropout is identity in eval
        in_specs = [x_spec, pe_spec]
        args = (x, pe_slice)
        bytes_accessed = 2 * x.nbytes + pe_slice.nbytes
        flops = x.size

    return pl.pallas_call(
        kernel,
        out_shape=jax.ShapeDtypeStruct(x.shape, x.dtype),
        grid=grid,
        in_specs=in_specs,
        out_specs=out_spec,
        compiler_params=pltpu.CompilerParams(
            dimension_semantics=("parallel",)),       # v7x: shard S-tiles over 2 TCs
        cost_estimate=pl.CostEstimate(
            flops=int(flops), transcendentals=0,
            bytes_accessed=int(bytes_accessed)),
    )(*args)


if __name__ == "__main__":
    S, B, D = 8, 2, 32
    key = jax.random.PRNGKey(0)
    k_x, k_drop = jax.random.split(key)
    x = jax.random.normal(k_x, (S, B, D), dtype=jnp.float32)

    pe = make_pe_table(d_model=D, max_len=500)

    # Training-mode forward (add PE + dropout), as the nn.Module default.
    y_train = positional_encoding(x, pe, key=k_drop, training=True)
    jax.block_until_ready(y_train)

    # Exact reference for training mode (same Bernoulli key -> same mask).
    keep_ref = jax.random.bernoulli(k_drop, p=1.0 - P_DROP, shape=x.shape)
    ref_train = jnp.where(keep_ref, (x + pe[:S]) / (1.0 - P_DROP), 0.0)
    assert jnp.allclose(y_train, ref_train, atol=1e-5), "train-mode mismatch vs reference"

    # Eval-mode forward (dropout is identity) vs pure-JAX reference.
    y_eval = positional_encoding(x, pe, training=False)
    jax.block_until_ready(y_eval)
    ref_eval = x + pe[:S]
    assert jnp.allclose(y_eval, ref_eval, atol=1e-6), "eval-mode mismatch vs reference"

    print("KERNEL_OK")
</pallas_src>

<mosaic_0001>
module attributes {stable_mosaic.version = 11 : i64} {
  func.func @_pe_add_dropout_kernel(%arg0: i32, %arg1: memref<8x2x32xf32, #tpu.memory_space<vmem>>, %arg2: memref<8x1x32xf32, #tpu.memory_space<vmem>>, %arg3: memref<8x2x32xf32, #tpu.memory_space<vmem>>, %arg4: memref<8x2x32xf32, #tpu.memory_space<vmem>>) attributes {dimension_semantics = [#tpu.dimension_semantics<parallel>], iteration_bounds = array<i64: 1>, scalar_prefetch = 0 : i64, scratch_operands = 0 : i64, tpu.core_type = #tpu.core_type<tc>, window_params = [{transform_indices = @transform_0, window_bounds = array<i64: 8, 2, 32>}, {transform_indices = @transform_1, window_bounds = array<i64: 8, 1, 32>}, {transform_indices = @transform_2, window_bounds = array<i64: 8, 2, 32>}, {transform_indices = @transform_3, window_bounds = array<i64: 8, 2, 32>}]} {
    %c0 = arith.constant 0 : index
    %c0_0 = arith.constant 0 : index
    %c0_1 = arith.constant 0 : index
    %0 = vector.load %arg1[%c0, %c0_0, %c0_1] : memref<8x2x32xf32, #tpu.memory_space<vmem>>, vector<8x2x32xf32>
    %c0_2 = arith.constant 0 : index
    %c0_3 = arith.constant 0 : index
    %c0_4 = arith.constant 0 : index
    %1 = vector.load %arg2[%c0_2, %c0_3, %c0_4] : memref<8x1x32xf32, #tpu.memory_space<vmem>>, vector<8x1x32xf32>
    %2 = vector.broadcast %1 : vector<8x1x32xf32> to vector<8x2x32xf32>
    %3 = arith.addf %0, %2 : vector<8x2x32xf32>
    %c0_5 = arith.constant 0 : index
    %c0_6 = arith.constant 0 : index
    %c0_7 = arith.constant 0 : index
    %4 = vector.load %arg3[%c0_5, %c0_6, %c0_7] : memref<8x2x32xf32, #tpu.memory_space<vmem>>, vector<8x2x32xf32>
    %5 = arith.mulf %3, %4 : vector<8x2x32xf32>
    %c0_8 = arith.constant 0 : index
    %c0_9 = arith.constant 0 : index
    %c0_10 = arith.constant 0 : index
    %6 = vector.load %arg4[%c0_8, %c0_9, %c0_10] : memref<8x2x32xf32, #tpu.memory_space<vmem>>, vector<8x2x32xf32>
    tpu.vector_store %arg4[%c0_8, %c0_9, %c0_10], %5 {strides = array<i32>} : memref<8x2x32xf32, #tpu.memory_space<vmem>>, vector<8x2x32xf32>,
    return
  }
  func.func @transform_0(%arg0: i32) -> (i32, i32, i32) {
    %c0_i32 = arith.constant 0 : i32
    %c0_i32_0 = arith.constant 0 : i32
    %c0_i32_1 = arith.constant 0 : i32
    return %arg0, %c0_i32, %c0_i32_0 : i32, i32, i32
  }
  func.func @transform_1(%arg0: i32) -> (i32, i32, i32) {
    %c0_i32 = arith.constant 0 : i32
    %c0_i32_0 = arith.constant 0 : i32
    %c0_i32_1 = arith.constant 0 : i32
    return %arg0, %c0_i32, %c0_i32_0 : i32, i32, i32
  }
  func.func @transform_2(%arg0: i32) -> (i32, i32, i32) {
    %c0_i32 = arith.constant 0 : i32
    %c0_i32_0 = arith.constant 0 : i32
    %c0_i32_1 = arith.constant 0 : i32
    return %arg0, %c0_i32, %c0_i32_0 : i32, i32, i32
  }
  func.func @transform_3(%arg0: i32) -> (i32, i32, i32) {
    %c0_i32 = arith.constant 0 : i32
    %c0_i32_0 = arith.constant 0 : i32
    %c0_i32_1 = arith.constant 0 : i32
    return %arg0, %c0_i32, %c0_i32_0 : i32, i32, i32
  }
}

</mosaic_0001>

<bundles_post_ra>
// kernel: tpu_custom_call.1
= control target key start
LH: loop header
LB: loop body
LE: loop exit
PB: predicated region body
PF: predicated region fallthrough
CT: control target
= control target key end

     0   :  { %8 = vsyncpa [#allocation3], 0  ;;  %s330_s0 = inlined_call_operand.hbm [shape: f32[8,2,32], index: 0, kind: input, shape index: {}]   ;;  %s331_s1 = inlined_call_operand.hbm [shape: f32[8,1,32], index: 1, kind: input, shape index: {}]   ;;  %s332_s2 = inlined_call_operand.hbm [shape: f32[8,2,32], index: 2, kind: input, shape index: {}]   ;;  %s333_s3 = inlined_call_operand.hbm [shape: f32[8,2,32], index: 3, kind: output, shape index: {}]  }
   0x1   :  { %9 = vsyncpa [#allocation6], 0  ;;  %s28_s14 = sshll.u32 %s331_s1, 4  ;;  %s29_s14 = int_to_ptr.hbm [resolvable:$true] %s28_s14 }
   0x2   :  { %10 = vsyncpa [#allocation4], 0  ;;  %s273_s15 = smov [#allocation5]   ;;  %s15_s19 = sshll.u32 %s330_s0, 4  ;;  %s16_s19 = int_to_ptr.hbm [resolvable:$true] %s15_s19 }
   0x3   :  { %s30_s16 = sshll.u32 %s273_s15, 4  ;;  %s274_s20 = smov 16   ;;  %s31_s16 = int_to_ptr.vmem [resolvable:$true] %s30_s16 }
   0x4   :  { %s275_s21 = smov 1   ;;  %s276_s22 = smov [#allocation2]  }
   0x5   :  { %36 = dma.hbm_to_vmem [thread:$0]  %s29_s14, 128, %s31_s16, [#allocation6], %s274_s20, %s274_s20, %s275_s21  }
   0x6   :  { %s17_s23 = sshll.u32 %s276_s22, 4  ;;  %s277_s24 = smov 32   ;;  %s18_s23 = int_to_ptr.vmem [resolvable:$true] %s17_s23 }
   0x7   :  { %s278_s25 = smov 2   ;;  %s41_s27 = sshll.u32 %s332_s2, 4  ;;  %s42_s27 = int_to_ptr.hbm [resolvable:$true] %s41_s27 }
   0x8   :  { %23 = dma.hbm_to_vmem [thread:$0]  %s16_s19, 256, %s18_s23, [#allocation3], %s277_s24, %s277_s24, %s278_s25  }
   0x9   :  { %s279_s28 = smov [#allocation7]  }
   0xa   :  { %s43_s0 = sshll.u32 %s279_s28, 4  ;;  %s44_s0 = int_to_ptr.vmem [resolvable:$true] %s43_s0 }
   0xb   :  { %49 = dma.hbm_to_vmem [thread:$0]  %s42_s27, 256, %s44_s0, [#allocation6], %s277_s24, %s277_s24, %s278_s25  }
   0xc   :  { %267 = dma.done.wait [#allocation3], 256  }
   0xd   :  { %268 = vsyncadd [#allocation3], 4294967040 }
   0xe   :  { %269 = dma.done.wait [#allocation6], 384  }
   0xf   :  { %270 = vsyncadd [#allocation6], 4294966912  ;;  %vm126_vm0 = vcmask 254976   ;;  %v62_v0 = vld [vmem:[#allocation2] sm:$0x3]  ;;  %s280_s2 = smov [#allocation8]  }
  0x10   :  { %v163_v1 = vld [vmem:[#allocation5] ss:$0 sm:$0xff]  ;;  %v110_v2 = vld [vmem:[#allocation7] sm:$0x3]  ;;  %v63_v3 = vld [vmem:[#allocation2 + $0x2] sm:$0x3] }
  0x11   :  { %v102_v4 = vadd.f32 %v163_v1, %v62_v0  ;;  %v164_v5 = vld [vmem:[#allocation5 + $0x1] ss:$0 sm:$0xff]  ;;  %v111_v6 = vld [vmem:[#allocation7 + $0x2] sm:$0x3]  ;;  %v64_v7 = vld [vmem:[#allocation2 + $0x4] sm:$0x3] }
  0x12   :  { %v165_v8 = vld [vmem:[#allocation5 + $0x2] ss:$0 sm:$0xff]  ;;  %v112_v9 = vld [vmem:[#allocation7 + $0x4] sm:$0x3]  ;;  %v103_v11 = vadd.f32 %v164_v5, %v63_v3  ;;  %v65_v12 = vld [vmem:[#allocation2 + $0x6] sm:$0x3] }
  0x13   :  { %v118_v10 = vmul.f32 %v110_v2, %v102_v4  ;;  %v166_v13 = vld [vmem:[#allocation5 + $0x3] ss:$0 sm:$0xff]  ;;  %v104_v14 = vadd.f32 %v165_v8, %v64_v7  ;;  %v113_v15 = vld [vmem:[#allocation7 + $0x6] sm:$0x3]  ;;  %v66_v16 = vld [vmem:[#allocation2 + $0x8] sm:$0x3] }
  0x14   :  { %v119_v17 = vmul.f32 %v111_v6, %v103_v11  ;;  %v105_v18 = vadd.f32 %v166_v13, %v65_v12  ;;  %v167_v19 = vld [vmem:[#allocation5 + $0x4] ss:$0 sm:$0xff]  ;;  %v114_v20 = vld [vmem:[#allocation7 + $0x8] sm:$0x3]  ;;  %v67_v22 = vld [vmem:[#allocation2 + $0xa] sm:$0x3] }
  0x15   :  { %127 = vst.msk [vmem:[#allocation8] sm:$0x3] %vm126_vm0, %v118_v10  ;;  %v120_v21 = vmul.f32 %v112_v9, %v104_v14  ;;  %v168_v23 = vld [vmem:[#allocation5 + $0x5] ss:$0 sm:$0xff]  ;;  %v106_v25 = vadd.f32 %v167_v19, %v66_v16  ;;  %v115_v26 = vld [vmem:[#allocation7 + $0xa] sm:$0x3] }
  0x16   :  { %128 = vst.msk [vmem:[#allocation8 + $0x2] sm:$0x3] %vm126_vm0, %v119_v17  ;;  %v121_v24 = vmul.f32 %v113_v15, %v105_v18  ;;  %v68_v27 = vld [vmem:[#allocation2 + $0xc] sm:$0x3]  ;;  %v107_v28 = vadd.f32 %v168_v23, %v67_v22  ;;  %v169_v29 = vld [vmem:[#allocation5 + $0x6] ss:$0 sm:$0xff] }
  0x17   :  { %129 = vst.msk [vmem:[#allocation8 + $0x4] sm:$0x3] %vm126_vm0, %v120_v21  ;;  %v122_v30 = vmul.f32 %v114_v20, %v106_v25  ;;  %v116_v31 = vld [vmem:[#allocation7 + $0xc] sm:$0x3]  ;;  %v69_v32 = vld [vmem:[#allocation2 + $0xe] sm:$0x3]  ;;  %v108_v34 = vadd.f32 %v169_v29, %v68_v27 }
  0x18   :  { %130 = vst.msk [vmem:[#allocation8 + $0x6] sm:$0x3] %vm126_vm0, %v121_v24  ;;  %v123_v33 = vmul.f32 %v115_v26, %v107_v28  ;;  %v170_v35 = vld [vmem:[#allocation5 + $0x7] ss:$0 sm:$0xff]  ;;  %v117_v36 = vld [vmem:[#allocation7 + $0xe] sm:$0x3] }
  0x19   :  { %131 = vst.msk [vmem:[#allocation8 + $0x8] sm:$0x3] %vm126_vm0, %v122_v30  ;;  %s139_s29 = sshll.u32 %s280_s2, 4  ;;  %s141_s5 = sshll.u32 %s333_s3, 4  ;;  %v124_v37 = vmul.f32 %v116_v31, %v108_v34  ;;  %v109_v38 = vadd.f32 %v170_v35, %v69_v32  ;;  %s140_s29 = int_to_ptr.vmem [resolvable:$true] %s139_s29  ;;  %s142_s5 = int_to_ptr.hbm [resolvable:$true] %s141_s5 }
  0x1a   :  { %132 = vst.msk [vmem:[#allocation8 + $0xa] sm:$0x3] %vm126_vm0, %v123_v33 }
  0x1b   :  { %133 = vst.msk [vmem:[#allocation8 + $0xc] sm:$0x3] %vm126_vm0, %v124_v37  ;;  %v125_v39 = vmul.f32 %v117_v36, %v109_v38 }
  0x1d   :  { %134 = vst.msk [vmem:[#allocation8 + $0xe] sm:$0x3] %vm126_vm0, %v125_v39 }
  0x1e   :  { %147 = dma.vmem_to_hbm [thread:$0]  %s140_s29, 256, %s142_s5, [#allocation4], %s277_s24, %s277_s24, %s278_s25  }
  0x1f   :  { %271 = dma.done.wait [#allocation4], 256  }
  0x20   :  { %272 = vsyncadd [#allocation4], 4294967040 }
  0x21   :  { %152 = vsyncpa [#allocation3], 1 }
  0x22   :  { %153 = vsyncpa [#allocation6], 1 }
  0x23   :  { %154 = vsyncpa [#allocation4], 1 }

</bundles_post_ra>
